<compile_context>
chip_gen: v7x
topology: tpu7x:2x2x1
jax: 0.10.0
libtpu: 0.0.40
codegen_flags: <defaults>
</compile_context>

<pallas_src>
import functools

import jax
import jax.numpy as jnp
from jax.experimental import pallas as pl
from jax.experimental.pallas import tpu as pltpu

GAMMA_NEG = 4
GAMMA_POS = 1
CLIP = 0.001
EPS = 1e-7

# Zero-contribution padding row: sigmoid(40) == 1.0 in f32, so both the log
# term and the asymmetric focal weight vanish exactly (binary & general path).
_PAD_LOGIT = 40.0
_PAD_TARGET = 1.0


def _int_pow(b, n):
    """b**n for a small static non-negative integer n (VPU-only, no EUP)."""
    assert n >= 0
    result = None
    while n > 0:
        if n & 1:
            result = b if result is None else result * b
        n >>= 1
        if n:
            b = b * b
    return jnp.ones_like(b) if result is None else result


def _asl_kernel(x_ref, y_ref, out_ref, *, binary_targets):
    x = x_ref[...].astype(jnp.float32)
    y = y_ref[...].astype(jnp.float32)

    xs_pos = jax.nn.sigmoid(x)
    xs_neg = jnp.minimum((1.0 - xs_pos) + CLIP, 1.0)   # xs_neg.add_(clip).clamp_(max=1)

    if binary_targets:
        # y in {0,1}: the two log terms collapse to one log of a selected prob,
        # and the asymmetric focal weight becomes a cheap integer power on the
        # VPU instead of jnp.power (exp+log on the single EUP slot).
        is_pos = y > 0.0
        prob = jnp.where(is_pos, xs_pos, xs_neg)
        log_term = jnp.log(jnp.maximum(prob, EPS))
        w_pos = _int_pow(1.0 - xs_pos, GAMMA_POS)
        w_neg = _int_pow(1.0 - xs_neg, GAMMA_NEG)
        loss = log_term * jnp.where(is_pos, w_pos, w_neg)
    else:
        # General (soft-label) path: exact transcription of the PyTorch module.
        anti = 1.0 - y
        loss = y * jnp.log(jnp.maximum(xs_pos, EPS))
        loss = loss + anti * jnp.log(jnp.maximum(xs_neg, EPS))
        base = 1.0 - xs_pos * y - xs_neg * anti
        expo = GAMMA_POS * y + GAMMA_NEG * anti
        loss = loss * jnp.power(base, expo)

    # Lane-dense per-tile partial (single sublane reduce per tile); the final
    # cross-lane reduction is done once in the wrapper.
    out_ref[0] = jnp.sum(loss, axis=0, keepdims=True)


def _pick_tile_b(B, row_bytes, budget_bytes, mult):
    """Largest batch tile whose double-buffered x+y footprint fits the budget."""
    cap = max(mult, budget_bytes // (2 * row_bytes))
    if B <= cap:
        return B                      # single full-extent block per grid step
    cap = max(mult, (cap // mult) * mult)
    # Prefer a nearby exact divisor (avoids the padding copy in the wrapper).
    t = cap
    while t >= max(mult, cap // 2):
        if B % t == 0:
            return t
        t -= mult
    return cap                        # wrapper pads the batch up to a multiple


def asymmetric_loss_optimized(rec0, rec1, x, y, *, binary_targets=True,
                              tile_b=None, vmem_budget_bytes=6 * 1024 * 1024):
    B, C = x.shape
    assert y.shape == (B, C)

    x_bytes = jnp.dtype(x.dtype).itemsize
    y_bytes = jnp.dtype(y.dtype).itemsize
    # Sub-32-bit dtypes pack along sublanes -> keep tiles multiples of 16 rows.
    mult = 16 if min(x_bytes, y_bytes) < 4 else 8
    if tile_b is None:
        tile_b = _pick_tile_b(B, (x_bytes + y_bytes) * C, vmem_budget_bytes, mult)

    # Pad the batch to a tile multiple with rows that contribute exactly zero.
    padded_b = ((B + tile_b - 1) // tile_b) * tile_b
    if padded_b != B:
        pad = padded_b - B
        x = jnp.concatenate([x, jnp.full((pad, C), _PAD_LOGIT, x.dtype)], axis=0)
        y = jnp.concatenate([y, jnp.full((pad, C), _PAD_TARGET, y.dtype)], axis=0)
    nb = padded_b // tile_b

    kernel = functools.partial(_asl_kernel, binary_targets=binary_targets)

    n_elems = padded_b * C
    cost = pl.CostEstimate(
        flops=(10 if binary_targets else 14) * n_elems,
        transcendentals=(2 if binary_targets else 5) * n_elems,
        bytes_accessed=n_elems * (x_bytes + y_bytes) + nb * C * 4,
    )

    partials = pl.pallas_call(
        kernel,
        out_shape=jax.ShapeDtypeStruct((nb, 1, C), jnp.float32),
        grid_spec=pltpu.PrefetchScalarGridSpec(
            num_scalar_prefetch=0,
            grid=(nb,),
            in_specs=[
                pl.BlockSpec((tile_b, C), lambda i: (i, 0)),   # logits tile
                pl.BlockSpec((tile_b, C), lambda i: (i, 0)),   # targets tile
            ],
            out_specs=pl.BlockSpec((1, 1, C), lambda i: (i, 0, 0)),
        ),
        compiler_params=pltpu.CompilerParams(
            # No carried state -> batch axis is embarrassingly parallel (lets
            # v7x shard the grid across its two TensorCores; no-op on v5e/v6e).
            dimension_semantics=("parallel",),
            vmem_limit_bytes=32 * 1024 * 1024,
        ),
        cost_estimate=cost,
    )(x, y)

    total = jnp.sum(partials)
    loss = -total / jnp.float32(B)        # original (unpadded) batch size
    loss = loss / jnp.float32(C)
    # `_loss += 0 * sum(rec[i])` kept in the wrapper: preserves NaN/Inf
    # propagation from rec without a per-grid-step DMA of data that contributes
    # a guaranteed-zero term.
    loss = loss + 0.0 * jnp.sum(rec0.astype(jnp.float32))
    loss = loss + 0.0 * jnp.sum(rec1.astype(jnp.float32))
    return loss


def _reference_loss(rec0, rec1, x, y):
    """Pure-JAX replica of the PyTorch forward, for verification."""
    x = x.astype(jnp.float32)
    y = y.astype(jnp.float32)
    anti = 1.0 - y
    xs_pos = jax.nn.sigmoid(x)
    xs_neg = jnp.minimum(1.0 - xs_pos + CLIP, 1.0)
    loss = y * jnp.log(jnp.maximum(xs_pos, EPS))
    loss = loss + anti * jnp.log(jnp.maximum(xs_neg, EPS))
    base = 1.0 - xs_pos * y - xs_neg * anti
    expo = GAMMA_POS * y + GAMMA_NEG * anti
    loss = loss * jnp.power(base, expo)
    _loss = -jnp.sum(loss) / x.shape[0]
    _loss = _loss / y.shape[1]
    _loss = _loss + 0.0 * jnp.sum(rec0.astype(jnp.float32))
    _loss = _loss + 0.0 * jnp.sum(rec1.astype(jnp.float32))
    return _loss


if __name__ == "__main__":
    key = jax.random.PRNGKey(0)
    k1, k2, k3, k4 = jax.random.split(key, 4)

    B, C = 16, 128
    x = jax.random.normal(k1, (B, C), dtype=jnp.float32) * 2.0           # logits
    # Targets are a binarized multi-label vector; ship them as bf16 (exact for
    # {0, 1}) to roughly halve target HBM traffic — the kernel casts in-VMEM.
    y = jax.random.bernoulli(k2, 0.3, (B, C)).astype(jnp.bfloat16)
    rec0 = jax.random.normal(k3, (B, 8), dtype=jnp.float32)               # rec[0]
    rec1 = jax.random.normal(k4, (B, 8), dtype=jnp.float32)               # rec[1]

    ref = _reference_loss(rec0, rec1, x, y)

    # Binary-target fast path (default).
    out = jax.block_until_ready(asymmetric_loss_optimized(rec0, rec1, x, y))
    assert jnp.allclose(out, ref, rtol=1e-5, atol=1e-5), (out, ref)

    # General soft-label path (exact transcription of the module's math).
    out_gen = jax.block_until_ready(
        asymmetric_loss_optimized(rec0, rec1, x, y, binary_targets=False))
    assert jnp.allclose(out_gen, ref, rtol=1e-5, atol=1e-5), (out_gen, ref)

    # Non-divisible batch exercises the zero-contribution padding path.
    Bo = 10
    out_pad = jax.block_until_ready(
        asymmetric_loss_optimized(rec0[:Bo], rec1[:Bo], x[:Bo], y[:Bo], tile_b=16))
    ref_pad = _reference_loss(rec0[:Bo], rec1[:Bo], x[:Bo], y[:Bo])
    assert jnp.allclose(out_pad, ref_pad, rtol=1e-5, atol=1e-5), (out_pad, ref_pad)

    print("KERNEL_OK")
</pallas_src>

<mosaic_0001>
module attributes {stable_mosaic.version = 11 : i64} {
  func.func @_asl_kernel(%arg0: i32, %arg1: memref<16x128xf32, #tpu.memory_space<vmem>>, %arg2: memref<16x128xbf16, #tpu.memory_space<vmem>>, %arg3: memref<1x1x128xf32, #tpu.memory_space<vmem>>) attributes {dimension_semantics = [#tpu.dimension_semantics<parallel>], iteration_bounds = array<i64: 1>, scalar_prefetch = 0 : i64, scratch_operands = 0 : i64, tpu.core_type = #tpu.core_type<tc>, window_params = [{transform_indices = @transform_0, window_bounds = array<i64: 16, 128>}, {transform_indices = @transform_1, window_bounds = array<i64: 16, 128>}, {transform_indices = @transform_2, window_bounds = array<i64: 1, 1, 128>}]} {
    %c0 = arith.constant 0 : index
    %c0_0 = arith.constant 0 : index
    %0 = vector.load %arg1[%c0, %c0_0] : memref<16x128xf32, #tpu.memory_space<vmem>>, vector<16x128xf32>
    %c0_1 = arith.constant 0 : index
    %c0_2 = arith.constant 0 : index
    %1 = vector.load %arg2[%c0_1, %c0_2] : memref<16x128xbf16, #tpu.memory_space<vmem>>, vector<16x128xbf16>
    %2 = arith.extf %1 : vector<16x128xbf16> to vector<16x128xf32>
    %3 = arith.negf %0 : vector<16x128xf32>
    %4 = math.exp %3 : vector<16x128xf32>
    %cst = arith.constant 1.000000e+00 : f32
    %5 = vector.broadcast %cst : f32 to vector<16x128xf32>
    %6 = arith.addf %5, %4 : vector<16x128xf32>
    %7 = arith.divf %5, %6 : vector<16x128xf32>
    %cst_3 = arith.constant 1.000000e+00 : f32
    %8 = vector.broadcast %cst_3 : f32 to vector<16x128xf32>
    %9 = arith.subf %8, %7 : vector<16x128xf32>
    %cst_4 = arith.constant 1.000000e-03 : f32
    %10 = vector.broadcast %cst_4 : f32 to vector<16x128xf32>
    %11 = arith.addf %9, %10 : vector<16x128xf32>
    %cst_5 = arith.constant 1.000000e+00 : f32
    %12 = vector.broadcast %cst_5 : f32 to vector<16x128xf32>
    %13 = arith.minimumf %11, %12 : vector<16x128xf32>
    %cst_6 = arith.constant 0.000000e+00 : f32
    %14 = vector.broadcast %cst_6 : f32 to vector<16x128xf32>
    %15 = arith.cmpf ogt, %2, %14 : vector<16x128xf32>
    %16 = arith.select %15, %7, %13 : vector<16x128xi1>, vector<16x128xf32>
    %cst_7 = arith.constant 1.000000e-07 : f32
    %17 = vector.broadcast %cst_7 : f32 to vector<16x128xf32>
    %18 = arith.maximumf %16, %17 : vector<16x128xf32>
    %19 = math.log %18 : vector<16x128xf32>
    %cst_8 = arith.constant 1.000000e+00 : f32
    %20 = vector.broadcast %cst_8 : f32 to vector<16x128xf32>
    %21 = arith.subf %20, %7 : vector<16x128xf32>
    %cst_9 = arith.constant 1.000000e+00 : f32
    %22 = vector.broadcast %cst_9 : f32 to vector<16x128xf32>
    %23 = arith.subf %22, %13 : vector<16x128xf32>
    %24 = arith.mulf %23, %23 : vector<16x128xf32>
    %25 = arith.mulf %24, %24 : vector<16x128xf32>
    %26 = arith.select %15, %21, %25 : vector<16x128xi1>, vector<16x128xf32>
    %27 = arith.mulf %19, %26 : vector<16x128xf32>
    %cst_10 = arith.constant dense<0.000000e+00> : vector<128xf32>
    %28 = vector.multi_reduction <add>, %27, %cst_10 [0] : vector<16x128xf32> to vector<128xf32>
    %29 = vector.shape_cast %28 : vector<128xf32> to vector<1x128xf32>
    %c0_11 = arith.constant 0 : index
    %c0_12 = arith.constant 0 : index
    %c0_13 = arith.constant 0 : index
    %30 = vector.load %arg3[%c0_11, %c0_12, %c0_13] : memref<1x1x128xf32, #tpu.memory_space<vmem>>, vector<1x1x128xf32>
    %31 = vector.shape_cast %30 : vector<1x1x128xf32> to vector<1x128xf32>
    %32 = vector.shape_cast %29 : vector<1x128xf32> to vector<1x1x128xf32>
    tpu.vector_store %arg3[%c0_11, %c0_12, %c0_13], %32 {strides = array<i32>} : memref<1x1x128xf32, #tpu.memory_space<vmem>>, vector<1x1x128xf32>,
    return
  }
  func.func @transform_0(%arg0: i32) -> (i32, i32) {
    %c0_i32 = arith.constant 0 : i32
    %c0_i32_0 = arith.constant 0 : i32
    return %arg0, %c0_i32 : i32, i32
  }
  func.func @transform_1(%arg0: i32) -> (i32, i32) {
    %c0_i32 = arith.constant 0 : i32
    %c0_i32_0 = arith.constant 0 : i32
    return %arg0, %c0_i32 : i32, i32
  }
  func.func @transform_2(%arg0: i32) -> (i32, i32, i32) {
    %c0_i32 = arith.constant 0 : i32
    %c0_i32_0 = arith.constant 0 : i32
    %c0_i32_1 = arith.constant 0 : i32
    return %arg0, %c0_i32, %c0_i32_0 : i32, i32, i32
  }
}

</mosaic_0001>

<bundles_post_ra>
// kernel: tpu_custom_call.1
= control target key start
LH: loop header
LB: loop body
LE: loop exit
PB: predicated region body
PF: predicated region fallthrough
CT: control target
= control target key end

     0   :  { %7 = vsyncpa [#allocation3], 0  ;;  %s279_s0 = inlined_call_operand.hbm [shape: f32[16,128], index: 0, kind: input, shape index: {}]   ;;  %s280_s1 = inlined_call_operand.hbm [shape: bf16[16,128], index: 1, kind: input, shape index: {}]   ;;  %s281_s2 = inlined_call_operand.hbm [shape: f32[1,1,128], index: 2, kind: output, shape index: {}]  }
   0x1   :  { %8 = vsyncpa [#allocation6], 0 }
   0x2   :  { %9 = vsyncpa [#allocation4], 0  ;;  %s205_s9 = smov [#allocation2]   ;;  %s133_s13 = scalar_lea.hbm %s279_s0, 256 }
   0x3   :  { %s15_s10 = sshll.u32 %s205_s9, 4  ;;  %p134_p0 = scmp.ne.s32.totalorder %s279_s0, %s133_s13  ;;  %s16_s10 = int_to_ptr.vmem [resolvable:$true] %s15_s10 }
   0x4   :  { %p137_p1 = scmp.lt.u32.totalorder %s133_s13, %s279_s0 }
   0x6   :  { %p139_p2 = pnand %p137_p1, %p134_p0 }
   0x8   :  { %142 = shalt.err (!%p139_p2)
}
   0x9   :  { %s143_s18 = scalar_lea.vmem %s16_s10, 256  ;;  %p148_p4 = scmp.lt.s32.totalorder %s16_s10, %s16_s10 }
   0xa   :  { %p144_p3 = scmp.ne.s32.totalorder %s16_s10, %s143_s18  ;;  %p149_p5 = scmp.lt.s32.totalorder %s143_s18, %s143_s18 }
   0xc   :  { %p150_p6 = por %p149_p5, %p148_p4 }
   0xe   :  { %p151_p7 = pnand %p150_p6, %p144_p3 }
  0x10   :  { %154 = shalt.err (!%p151_p7)
}
  0x11   :  { %s206_s19 = smov 128   ;;  %s207_s20 = smov 8  }
  0x12   :  { %21 = dma.hbm_to_vmem [thread:$0]  %s279_s0, 256, %s16_s10, [#allocation3], %s206_s19, %s206_s19, %s207_s20  }
  0x13   :  { %s208_s23 = smov [#allocation5]   ;;  %s155_s27 = scalar_lea.hbm %s280_s1, 128 }
  0x14   :  { %s27_s24 = sshll.u32 %s208_s23, 4  ;;  %p156_p8 = scmp.ne.s32.totalorder %s280_s1, %s155_s27  ;;  %s28_s24 = int_to_ptr.vmem [resolvable:$true] %s27_s24 }
  0x15   :  { %p159_p9 = scmp.lt.u32.totalorder %s155_s27, %s280_s1 }
  0x17   :  { %p161_p10 = pnand %p159_p9, %p156_p8 }
  0x19   :  { %164 = shalt.err (!%p161_p10)
}
  0x1a   :  { %s165_s4 = scalar_lea.vmem %s28_s24, 128  ;;  %p170_p12 = scmp.lt.s32.totalorder %s28_s24, %s28_s24 }
  0x1b   :  { %p166_p11 = scmp.ne.s32.totalorder %s28_s24, %s165_s4  ;;  %p171_p13 = scmp.lt.s32.totalorder %s165_s4, %s165_s4 }
  0x1d   :  { %p172_p0 = por %p171_p13, %p170_p12 }
  0x1f   :  { %p173_p1 = pnand %p172_p0, %p166_p11 }
  0x21   :  { %176 = shalt.err (!%p173_p1)
}
  0x22   :  { %s209_s0 = smov 64   ;;  %s210_s5 = smov 4  }
  0x23   :  { %33 = dma.hbm_to_vmem [thread:$0]  %s280_s1, 128, %s28_s24, [#allocation6], %s209_s0, %s209_s0, %s210_s5  }
  0x24   :  { %199 = dma.done.wait [#allocation3], 256  }
  0x25   :  { %200 = vsyncadd [#allocation3], 4294967040 }
  0x26   :  { %201 = dma.done.wait [#allocation6], 128  }
  0x27   :  { %202 = vsyncadd [#allocation6], 4294967168  ;;  %v40_v0 = vld [vmem:[#allocation2] sm:$0xff]  ;;  %v41_v1 = vld [vmem:[#allocation2 + $0x8] sm:$0xff]  ;;  %s211_s1 = smov [#allocation7]  }
  0x28   :  { %v108_v2 = vmul.f32 -1.442695, %v40_v0  ;;  %v109_v3 = vmul.f32 -1.442695, %v41_v1  ;;  %v111_v8 = vld [vmem:[#allocation5] sm:$0xff]   ;;  %s98_s8 = sshll.u32 %s211_s1, 4  ;;  %s99_s8 = int_to_ptr.vmem [resolvable:$true] %s98_s8 }
  0x29   :  { %v112_v10 = vunpack.c.l.bf16 %v111_v8  ;;  %v113_v12 = vunpack.c.h.bf16 %v111_v8  ;;  %s177_s9 = scalar_lea.vmem %s99_s8, 16  ;;  %s181_s10 = scalar_lea.vmem %s99_s8, 32 }
  0x2a   :  { %121 = vpow2.f32 %v108_v2  ;;  %p178_p2 = scmp.ne.s32.totalorder %s99_s8, %s177_s9  ;;  %p182_p3 = scmp.lt.s32.totalorder %s99_s8, %s99_s8 }
  0x2b   :  { %123 = vpow2.f32 %v109_v3  ;;  %vm251_vm0 = vcmp.gt.f32.partialorder %v112_v10, 0.0  ;;  %vm255_vm1 = vcmp.gt.f32.partialorder %v113_v12, 0.0  ;;  %p183_p4 = scmp.lt.s32.totalorder %s181_s10, %s177_s9 }
  0x2d   :  { %p184_p5 = por %p183_p4, %p182_p3 }
  0x2f   :  { %p185_p6 = pnand %p184_p5, %p178_p2 }
  0x34   :  { %v122_v4 = vpop.eup %121 }
  0x35   :  { %v124_v5 = vpop.eup %123  ;;  %v52_v6 = vadd.f32 1.0, %v122_v4 }
  0x36   :  { %v53_v7 = vadd.f32 1.0, %v124_v5 }
  0x37   :  { %125 = vrcp.f32 %v52_v6 }
  0x38   :  { %127 = vrcp.f32 %v53_v7 }
  0x41   :  { %v126_v9 = vpop.eup %125 }
  0x42   :  { %v128_v11 = vpop.eup %127  ;;  %v58_v13 = vsub.f32 1.0, %v126_v9 }
  0x43   :  { %v59_v14 = vsub.f32 1.0, %v128_v11 }
  0x44   :  { %v60_v15 = vadd.f32 0.001, %v58_v13 }
  0x45   :  { %v61_v16 = vadd.f32 0.001, %v59_v14 }
  0x46   :  { %v62_v18 = vmin.f32 %v60_v15, 1.0 }
  0x47   :  { %v63_v20 = vmin.f32 %v61_v16, 1.0 }
  0x48   :  { %v66_v21 = vsel %vm251_vm0, %v126_v9, %v62_v18  ;;  %v74_v24 = vsub.f32 1.0, %v62_v18 }
  0x49   :  { %v67_v22 = vsel %vm255_vm1, %v128_v11, %v63_v20  ;;  %v68_v23 = vmax.f32 %v66_v21, 1e-07  ;;  %v75_v26 = vsub.f32 1.0, %v63_v20 }
  0x4a   :  { %v69_v25 = vmax.f32 %v67_v22, 1e-07  ;;  %v76_v27 = vmul.f32 %v74_v24, %v74_v24 }
  0x4b   :  { %129 = vlog2.f32 %v68_v23  ;;  %v77_v28 = vmul.f32 %v75_v26, %v75_v26 }
  0x4c   :  { %131 = vlog2.f32 %v69_v25  ;;  %v78_v29 = vmul.f32 %v76_v27, %v76_v27 }
  0x4d   :  { %v79_v30 = vmul.f32 %v77_v28, %v77_v28 }
  0x4e   :  { %v80_v32 = vsel %vm251_vm0, %v58_v13, %v78_v29 }
  0x4f   :  { %v81_v35 = vsel %vm255_vm1, %v59_v14, %v79_v30 }
  0x55   :  { %v130_v31 = vpop.eup %129 }
  0x56   :  { %v132_v33 = vpop.eup %131  ;;  %v71_v34 = vmul.f32 0.6931472, %v130_v31 }
  0x57   :  { %v73_v36 = vmul.f32 0.6931472, %v132_v33 }
  0x58   :  { %v82_v37 = vmul.f32 %v80_v32, %v71_v34 }
  0x59   :  { %v83_v38 = vmul.f32 %v81_v35, %v73_v36 }
  0x5b   :  { %v84_v39 = vadd.f32 %v83_v38, %v82_v37 }
  0x5d   :  { %v85_v40 = vrot.slane %v84_v39, 4 }
  0x5f   :  { %v86_v41 = vadd.f32 %v85_v40, %v84_v39 }
  0x61   :  { %v87_v42 = vrot.slane %v86_v41, 2 }
  0x63   :  { %v88_v43 = vadd.f32 %v87_v42, %v86_v41 }
  0x65   :  { %v89_v44 = vrot.slane %v88_v43, 1 }
  0x67   :  { %v90_v45 = vadd.f32 %v89_v44, %v88_v43 }
  0x69   :  { %91 = vst [vmem:[#allocation7] sm:$0x1] %v90_v45 }
  0x6a   :  { %188 = shalt.err (!%p185_p6)
}
  0x6b   :  { %s189_s13 = scalar_lea.hbm %s281_s2, 16 }
  0x6c   :  { %p190_p7 = scmp.ne.s32.totalorder %s281_s2, %s189_s13  ;;  %p193_p8 = scmp.lt.u32.totalorder %s189_s13, %s281_s2 }
  0x6e   :  { %p195_p9 = pnand %p193_p8, %p190_p7 }
  0x70   :  { %198 = shalt.err (!%p195_p9)
}
  0x71   :  { %101 = dma.vmem_to_hbm [thread:$0]  %s99_s8, 16, %s281_s2, [#allocation4]  }
  0x72   :  { %203 = dma.done.wait [#allocation4], 16  }
  0x73   :  { %204 = vsyncadd [#allocation4], 4294967280 }
  0x74   :  { %105 = vsyncpa [#allocation3], 1 }
  0x75   :  { %106 = vsyncpa [#allocation6], 1 }
  0x76   :  { %107 = vsyncpa [#allocation4], 1 }

</bundles_post_ra>
